<compile_context>
chip_gen: v7x
topology: tpu7x:2x2x1
jax: 0.10.0
libtpu: 0.0.40
codegen_flags: <defaults>
</compile_context>

<pallas_src>
import numpy as np
import jax
import jax.numpy as jnp
from jax.experimental import pallas as pl
from jax.experimental.pallas import tpu as pltpu

KERNEL_SIZE = 11
SIGMA = 1.5
PAD = (KERNEL_SIZE - 1) // 2
K1, K2 = 0.01, 0.03

# Per-step slab height cap = MXU contraction depth.  256 fills the v6e/v7x
# 2x256^2 MXU; going deeper only adds redundant FLOPs to the block-diagonal
# column blur (its cost per output element is 2*PH flops).
_MAX_PH = 256
# Secondary cap so the ~10 live (PH, W) f32 temporaries stay comfortably inside
# every generation's scoped VMEM (including v5e's default and v7x's 64 MiB).
_MAX_SLAB_ELEMS = 128 * 1024


# ---------------------------------------------------------------------------
# Host-side glue: (reflect-pad + gaussian valid-conv) folded into matrices.
# ---------------------------------------------------------------------------
def _gaussian_1d(kernel_size: int, sigma: float) -> np.ndarray:
    dist = np.arange((1 - kernel_size) / 2.0, (1 + kernel_size) / 2.0, 1.0)
    g = np.exp(-(dist ** 2) / (2.0 * sigma ** 2))
    return (g / g.sum()).astype(np.float32)


def _reflect(m: int, n: int) -> int:
    if m < 0:
        return -m
    if m >= n:
        return 2 * n - 2 - m
    return m


def _blur_matrix(n: int, g: np.ndarray) -> np.ndarray:
    """A[i, j] such that (A @ x) == valid gaussian conv of reflect-padded x."""
    a = np.zeros((n, n), np.float32)
    for i in range(n):
        for u in range(len(g)):
            a[i, _reflect(i + u - PAD, n)] += g[u]
    return a


def _pick_planes_per_step(nc: int, h: int, w: int) -> int:
    """Number of image planes processed per grid step.

    Largest divisor P of nc such that the (P*H, W) slab fits the MXU-depth /
    VMEM caps, its sublane extent is 8-aligned, and at least two grid steps
    remain (so the 'parallel' grid axis shards across both v7x TensorCores).
    Falls back to the SMALLEST legal divisor (never the largest) if nothing
    satisfies the caps, so the working set stays minimal.
    """
    divisors = [p for p in range(1, nc + 1) if nc % p == 0]
    legal = [p for p in divisors if (p * h) % 8 == 0 or p == nc]
    if not legal:
        legal = [1]
    good = [p for p in legal
            if p * h <= _MAX_PH
            and p * h * w <= _MAX_SLAB_ELEMS
            and (nc < 2 or p <= nc // 2)]   # keep G >= 2 when possible
    return max(good) if good else min(legal)


# ---------------------------------------------------------------------------
# Pallas kernel: P planes per step, 10 small MXU matmuls, lane-wise partials.
# ---------------------------------------------------------------------------
def _make_kernel(plane_h: int, pad: int):
    def kernel(c_ref, awt_ref, ahb_ref, xh_ref, x_ref, l1_ref, ssim_ref):
        p = xh_ref[...].astype(jnp.float32)      # (P*H, W) predicted rows
        t = x_ref[...].astype(jnp.float32)       # (P*H, W) target rows
        ph, w = p.shape
        c1 = c_ref[0]
        c2 = c_ref[1]
        awt = awt_ref[...]                       # (W, W)  A_w^T, pre-transposed
        ahb = ahb_ref[...]                       # (PH, PH) blockdiag(A_h)

        def blur(z):
            # Separable gaussian blur (reflect padding folded into the host
            # matrices): row blur contracts W, column blur contracts PH via the
            # per-plane block-diagonal A_h.  Each product is blurred and
            # consumed immediately — no concatenated 5x(PH,W) slab kept live.
            rb = jnp.dot(z, awt, preferred_element_type=jnp.float32)
            return jnp.dot(ahb, rb, preferred_element_type=jnp.float32)

        mu_p = blur(p)
        mu_t = blur(t)
        # TODO(synk): the mean blurs could run in bf16 on v6e/v7x (~4x MXU
        # rate), but the mu_pp - mu^2 cancellation below does not survive the
        # 2e-3 reference tolerance, so everything stays f32.
        sigma_p = blur(p * p) - mu_p * mu_p
        sigma_t = blur(t * t) - mu_t * mu_t
        sigma_pt = blur(p * t) - mu_p * mu_t

        num = (2.0 * mu_p * mu_t + c1) * (2.0 * sigma_pt + c2)
        den = (mu_p * mu_p + mu_t * mu_t + c1) * (sigma_p + sigma_t + c2)
        ssim_map = num * pl.reciprocal(den, approx=True)   # EUP, off the VALU

        # SSIM crop mask built in-register (iota + compares on the VPU) instead
        # of a DMA'd (PH, W) constant: exclude rows/cols within PAD of each
        # plane's border.
        row_in_plane = jax.lax.broadcasted_iota(jnp.int32, (ph, w), 0) % plane_h
        col = jax.lax.broadcasted_iota(jnp.int32, (ph, w), 1)
        keep = ((row_in_plane >= pad) & (row_in_plane < plane_h - pad)
                & (col >= pad) & (col < w - pad))

        l1_part = jnp.sum(jnp.abs(p - t), axis=0, keepdims=True)          # (1, W)
        ssim_part = jnp.sum(jnp.where(keep, ssim_map, 0.0),
                            axis=0, keepdims=True)                        # (1, W)
        l1_ref[...] = l1_part.reshape(1, 1, w)
        ssim_ref[...] = ssim_part.reshape(1, 1, w)

    return kernel


# ---------------------------------------------------------------------------
# Wrapper
# ---------------------------------------------------------------------------
def mixed_ae_loss(x_hat, x, ssim_weight: float, data_range=None):
    assert x_hat.shape == x.shape and x_hat.ndim == 4
    N, C, H, W = x_hat.shape
    assert H >= KERNEL_SIZE and W >= KERNEL_SIZE, \
        "spatial dims must be >= the 11-tap gaussian window"
    nc = N * C
    l1_weight = 1.0 - ssim_weight

    P = _pick_planes_per_step(nc, H, W)
    G = nc // P
    PH = P * H

    # Native-dtype, data-movement-free reshape; the f32 cast happens in-kernel.
    planes_hat = x_hat.reshape(nc * H, W)
    planes = x.reshape(nc * H, W)

    # Host constants: blur matrices with reflect padding folded in.
    g = _gaussian_1d(KERNEL_SIZE, SIGMA)
    ah = _blur_matrix(H, g)                                   # (H, H)
    aw_t = jnp.asarray(_blur_matrix(W, g).T)                  # (W, W) pre-transposed
    if P > 1:
        ah_blk = jnp.asarray(np.kron(np.eye(P, dtype=np.float32), ah))
    else:
        ah_blk = jnp.asarray(ah)
    # TODO(synk): for very large H/W (>~1k) replace the dense blur matrices
    # with a shift/roll-based separable conv to avoid O(H^2)/O(W^2) VMEM.

    if data_range is None:
        # torchmetrics default: data_range = max(preds.ptp(), target.ptp()).
        # Pass data_range explicitly (e.g. 1.0 for [0,1] images) to skip this
        # extra full-HBM read of both inputs.
        dr = jnp.maximum(jnp.max(x_hat) - jnp.min(x_hat),
                         jnp.max(x) - jnp.min(x)).astype(jnp.float32)
    else:
        dr = jnp.asarray(data_range, jnp.float32)
    c12 = jnp.stack([(K1 * dr) ** 2, (K2 * dr) ** 2])

    kernel = _make_kernel(H, PAD)

    l1_parts, ssim_parts = pl.pallas_call(
        kernel,
        out_shape=(jax.ShapeDtypeStruct((G, 1, W), jnp.float32),
                   jax.ShapeDtypeStruct((G, 1, W), jnp.float32)),
        grid=(G,),
        in_specs=[
            pl.BlockSpec((2,), lambda i: (0,),
                         memory_space=pltpu.MemorySpace.SMEM),   # c1, c2
            pl.BlockSpec((W, W), lambda i: (0, 0)),              # A_w^T (grid-invariant)
            pl.BlockSpec((PH, PH), lambda i: (0, 0)),            # blockdiag(A_h)
            pl.BlockSpec((PH, W), lambda i: (i, 0)),             # x_hat rows
            pl.BlockSpec((PH, W), lambda i: (i, 0)),             # x rows
        ],
        out_specs=(pl.BlockSpec((1, 1, W), lambda i: (i, 0, 0)),
                   pl.BlockSpec((1, 1, W), lambda i: (i, 0, 0))),
        compiler_params=pltpu.CompilerParams(
            dimension_semantics=("parallel",),
            vmem_limit_bytes=32 << 20),
    )(c12, aw_t, ah_blk, planes_hat, planes)

    l1 = jnp.sum(l1_parts) / (nc * H * W)
    ssim = jnp.sum(ssim_parts) / (nc * (H - 2 * PAD) * (W - 2 * PAD))
    return l1_weight * l1 + ssim_weight * (1.0 - ssim)


# ---------------------------------------------------------------------------
# Pure-JAX reference (same math, no Pallas) for a sanity check.
# ---------------------------------------------------------------------------
def reference_loss(x_hat, x, ssim_weight: float):
    N, C, H, W = x_hat.shape
    g = _gaussian_1d(KERNEL_SIZE, SIGMA)
    ah = jnp.asarray(_blur_matrix(H, g))
    aw = jnp.asarray(_blur_matrix(W, g))
    p = x_hat.reshape(N * C, H, W).astype(jnp.float32)
    t = x.reshape(N * C, H, W).astype(jnp.float32)

    dr = jnp.maximum(jnp.max(x_hat) - jnp.min(x_hat),
                     jnp.max(x) - jnp.min(x)).astype(jnp.float32)
    c1 = (K1 * dr) ** 2
    c2 = (K2 * dr) ** 2

    blur = lambda z: jnp.matmul(jnp.matmul(ah, z), aw.T)
    mu_p, mu_t = blur(p), blur(t)
    sp = blur(p * p) - mu_p * mu_p
    st = blur(t * t) - mu_t * mu_t
    spt = blur(p * t) - mu_p * mu_t
    ssim_map = ((2 * mu_p * mu_t + c1) * (2 * spt + c2)) / \
               ((mu_p * mu_p + mu_t * mu_t + c1) * (sp + st + c2))
    ssim = ssim_map[:, PAD:H - PAD, PAD:W - PAD].mean()
    l1 = jnp.mean(jnp.abs(p - t))
    return (1.0 - ssim_weight) * l1 + ssim_weight * (1.0 - ssim)


if __name__ == "__main__":
    key = jax.random.PRNGKey(0)
    k1, k2 = jax.random.split(key)
    N, C, H, W = 2, 4, 16, 16
    x = jax.random.uniform(k1, (N, C, H, W), dtype=jnp.float32)
    x_hat = jnp.clip(x + 0.1 * jax.random.normal(k2, (N, C, H, W),
                                                 dtype=jnp.float32), 0.0, 1.0)
    ssim_weight = 0.7  # deterministic constructor arg

    loss = mixed_ae_loss(x_hat, x, ssim_weight)
    jax.block_until_ready(loss)

    ref = reference_loss(x_hat, x, ssim_weight)
    np.testing.assert_allclose(np.asarray(loss), np.asarray(ref),
                               rtol=2e-3, atol=2e-3)
    print("KERNEL_OK")
</pallas_src>

<mosaic_0001>
module attributes {stable_mosaic.version = 11 : i64} {
  func.func @kernel(%arg0: i32, %arg1: memref<2xf32, #tpu.memory_space<smem>>, %arg2: memref<16x16xf32, #tpu.memory_space<vmem>>, %arg3: memref<64x64xf32, #tpu.memory_space<vmem>>, %arg4: memref<64x16xf32, #tpu.memory_space<vmem>>, %arg5: memref<64x16xf32, #tpu.memory_space<vmem>>, %arg6: memref<1x1x16xf32, #tpu.memory_space<vmem>>, %arg7: memref<1x1x16xf32, #tpu.memory_space<vmem>>) attributes {dimension_semantics = [#tpu.dimension_semantics<parallel>], iteration_bounds = array<i64: 2>, scalar_prefetch = 0 : i64, scratch_operands = 0 : i64, tpu.core_type = #tpu.core_type<tc>, window_params = [{transform_indices = @transform_0, window_bounds = array<i64: 2>}, {pipeline_mode = #tpu.pipeline_mode<synchronous>, transform_indices = @transform_1, window_bounds = array<i64: 16, 16>}, {pipeline_mode = #tpu.pipeline_mode<synchronous>, transform_indices = @transform_2, window_bounds = array<i64: 64, 64>}, {transform_indices = @transform_3, window_bounds = array<i64: 64, 16>}, {transform_indices = @transform_4, window_bounds = array<i64: 64, 16>}, {transform_indices = @transform_5, window_bounds = array<i64: 1, 1, 16>}, {transform_indices = @transform_6, window_bounds = array<i64: 1, 1, 16>}]} {
    %c0 = arith.constant 0 : index
    %c0_0 = arith.constant 0 : index
    %0 = vector.load %arg4[%c0, %c0_0] : memref<64x16xf32, #tpu.memory_space<vmem>>, vector<64x16xf32>
    %c0_1 = arith.constant 0 : index
    %c0_2 = arith.constant 0 : index
    %1 = vector.load %arg5[%c0_1, %c0_2] : memref<64x16xf32, #tpu.memory_space<vmem>>, vector<64x16xf32>
    %c0_3 = arith.constant 0 : index
    %2 = memref.load %arg1[%c0_3] : memref<2xf32, #tpu.memory_space<smem>>
    %c1 = arith.constant 1 : index
    %3 = memref.load %arg1[%c1] : memref<2xf32, #tpu.memory_space<smem>>
    %c0_4 = arith.constant 0 : index
    %c0_5 = arith.constant 0 : index
    %4 = vector.load %arg2[%c0_4, %c0_5] : memref<16x16xf32, #tpu.memory_space<vmem>>, vector<16x16xf32>
    %c0_6 = arith.constant 0 : index
    %c0_7 = arith.constant 0 : index
    %5 = vector.load %arg3[%c0_6, %c0_7] : memref<64x64xf32, #tpu.memory_space<vmem>>, vector<64x64xf32>
    %cst = arith.constant dense<0.000000e+00> : vector<64x16xf32>
    %6 = tpu.matmul %0, %4, %cst {dimension_numbers = #tpu.dot_dimension_numbers<[1], [0], [0], [1], [0, 0, 1, 1], [], []>} : vector<64x16xf32>, vector<16x16xf32>, vector<64x16xf32> -> vector<64x16xf32>
    %cst_8 = arith.constant dense<0.000000e+00> : vector<64x16xf32>
    %7 = tpu.matmul %5, %6, %cst_8 {dimension_numbers = #tpu.dot_dimension_numbers<[1], [0], [0], [1], [0, 0, 1, 1], [], []>} : vector<64x64xf32>, vector<64x16xf32>, vector<64x16xf32> -> vector<64x16xf32>
    %cst_9 = arith.constant dense<0.000000e+00> : vector<64x16xf32>
    %8 = tpu.matmul %1, %4, %cst_9 {dimension_numbers = #tpu.dot_dimension_numbers<[1], [0], [0], [1], [0, 0, 1, 1], [], []>} : vector<64x16xf32>, vector<16x16xf32>, vector<64x16xf32> -> vector<64x16xf32>
    %cst_10 = arith.constant dense<0.000000e+00> : vector<64x16xf32>
    %9 = tpu.matmul %5, %8, %cst_10 {dimension_numbers = #tpu.dot_dimension_numbers<[1], [0], [0], [1], [0, 0, 1, 1], [], []>} : vector<64x64xf32>, vector<64x16xf32>, vector<64x16xf32> -> vector<64x16xf32>
    %10 = arith.mulf %0, %0 : vector<64x16xf32>
    %cst_11 = arith.constant dense<0.000000e+00> : vector<64x16xf32>
    %11 = tpu.matmul %10, %4, %cst_11 {dimension_numbers = #tpu.dot_dimension_numbers<[1], [0], [0], [1], [0, 0, 1, 1], [], []>} : vector<64x16xf32>, vector<16x16xf32>, vector<64x16xf32> -> vector<64x16xf32>
    %cst_12 = arith.constant dense<0.000000e+00> : vector<64x16xf32>
    %12 = tpu.matmul %5, %11, %cst_12 {dimension_numbers = #tpu.dot_dimension_numbers<[1], [0], [0], [1], [0, 0, 1, 1], [], []>} : vector<64x64xf32>, vector<64x16xf32>, vector<64x16xf32> -> vector<64x16xf32>
    %13 = arith.mulf %7, %7 : vector<64x16xf32>
    %14 = arith.subf %12, %13 : vector<64x16xf32>
    %15 = arith.mulf %1, %1 : vector<64x16xf32>
    %cst_13 = arith.constant dense<0.000000e+00> : vector<64x16xf32>
    %16 = tpu.matmul %15, %4, %cst_13 {dimension_numbers = #tpu.dot_dimension_numbers<[1], [0], [0], [1], [0, 0, 1, 1], [], []>} : vector<64x16xf32>, vector<16x16xf32>, vector<64x16xf32> -> vector<64x16xf32>
    %cst_14 = arith.constant dense<0.000000e+00> : vector<64x16xf32>
    %17 = tpu.matmul %5, %16, %cst_14 {dimension_numbers = #tpu.dot_dimension_numbers<[1], [0], [0], [1], [0, 0, 1, 1], [], []>} : vector<64x64xf32>, vector<64x16xf32>, vector<64x16xf32> -> vector<64x16xf32>
    %18 = arith.mulf %9, %9 : vector<64x16xf32>
    %19 = arith.subf %17, %18 : vector<64x16xf32>
    %20 = arith.mulf %0, %1 : vector<64x16xf32>
    %cst_15 = arith.constant dense<0.000000e+00> : vector<64x16xf32>
    %21 = tpu.matmul %20, %4, %cst_15 {dimension_numbers = #tpu.dot_dimension_numbers<[1], [0], [0], [1], [0, 0, 1, 1], [], []>} : vector<64x16xf32>, vector<16x16xf32>, vector<64x16xf32> -> vector<64x16xf32>
    %cst_16 = arith.constant dense<0.000000e+00> : vector<64x16xf32>
    %22 = tpu.matmul %5, %21, %cst_16 {dimension_numbers = #tpu.dot_dimension_numbers<[1], [0], [0], [1], [0, 0, 1, 1], [], []>} : vector<64x64xf32>, vector<64x16xf32>, vector<64x16xf32> -> vector<64x16xf32>
    %23 = arith.mulf %7, %9 : vector<64x16xf32>
    %24 = arith.subf %22, %23 : vector<64x16xf32>
    %cst_17 = arith.constant 2.000000e+00 : f32
    %25 = vector.broadcast %cst_17 : f32 to vector<64x16xf32>
    %26 = arith.mulf %25, %7 : vector<64x16xf32>
    %27 = arith.mulf %26, %9 : vector<64x16xf32>
    %28 = vector.broadcast %2 : f32 to vector<64x16xf32>
    %29 = arith.addf %27, %28 : vector<64x16xf32>
    %cst_18 = arith.constant 2.000000e+00 : f32
    %30 = vector.broadcast %cst_18 : f32 to vector<64x16xf32>
    %31 = arith.mulf %30, %24 : vector<64x16xf32>
    %32 = vector.broadcast %3 : f32 to vector<64x16xf32>
    %33 = arith.addf %31, %32 : vector<64x16xf32>
    %34 = arith.mulf %29, %33 : vector<64x16xf32>
    %35 = arith.mulf %7, %7 : vector<64x16xf32>
    %36 = arith.mulf %9, %9 : vector<64x16xf32>
    %37 = arith.addf %35, %36 : vector<64x16xf32>
    %38 = vector.broadcast %2 : f32 to vector<64x16xf32>
    %39 = arith.addf %37, %38 : vector<64x16xf32>
    %40 = arith.addf %14, %19 : vector<64x16xf32>
    %41 = vector.broadcast %3 : f32 to vector<64x16xf32>
    %42 = arith.addf %40, %41 : vector<64x16xf32>
    %43 = arith.mulf %39, %42 : vector<64x16xf32>
    %44 = tpu.reciprocal %43 {approx = true} : vector<64x16xf32> -> vector<64x16xf32>
    %45 = arith.mulf %34, %44 : vector<64x16xf32>
    %46 = tpu.iota {dimensions = array<i32: 0>} : vector<64x16xi32>
    %c16_i32 = arith.constant 16 : i32
    %c0_i32 = arith.constant 0 : i32
    %47 = arith.cmpi eq, %c16_i32, %c0_i32 : i32
    %c1_i32 = arith.constant 1 : i32
    %48 = arith.select %47, %c1_i32, %c16_i32 : i32
    %49 = vector.broadcast %48 : i32 to vector<64x16xi32>
    %50 = arith.remsi %46, %49 : vector<64x16xi32>
    %c0_i32_19 = arith.constant 0 : i32
    %51 = vector.broadcast %c0_i32_19 : i32 to vector<64x16xi32>
    %52 = arith.cmpi ne, %50, %51 : vector<64x16xi32>
    %c0_i32_20 = arith.constant 0 : i32
    %53 = vector.broadcast %c0_i32_20 : i32 to vector<64x16xi32>
    %54 = arith.cmpi slt, %50, %53 : vector<64x16xi32>
    %c0_i32_21 = arith.constant 0 : i32
    %55 = arith.cmpi slt, %48, %c0_i32_21 : i32
    %56 = vector.broadcast %55 : i1 to vector<64x16xi1>
    %57 = vector.broadcast %56 : vector<64x16xi1> to vector<64x16xi1>
    %58 = arith.xori %54, %57 : vector<64x16xi1>
    %59 = arith.andi %58, %52 : vector<64x16xi1>
    %60 = vector.broadcast %48 : i32 to vector<64x16xi32>
    %61 = arith.addi %50, %60 : vector<64x16xi32>
    %62 = arith.select %59, %61, %50 : vector<64x16xi1>, vector<64x16xi32>
    %63 = tpu.iota {dimensions = array<i32: 1>} : vector<64x16xi32>
    %c5_i32 = arith.constant 5 : i32
    %64 = vector.broadcast %c5_i32 : i32 to vector<64x16xi32>
    %65 = arith.cmpi sge, %62, %64 : vector<64x16xi32>
    %c11_i32 = arith.constant 11 : i32
    %66 = vector.broadcast %c11_i32 : i32 to vector<64x16xi32>
    %67 = arith.cmpi slt, %62, %66 : vector<64x16xi32>
    %68 = arith.andi %65, %67 : vector<64x16xi1>
    %c5_i32_22 = arith.constant 5 : i32
    %69 = vector.broadcast %c5_i32_22 : i32 to vector<64x16xi32>
    %70 = arith.cmpi sge, %63, %69 : vector<64x16xi32>
    %71 = arith.andi %68, %70 : vector<64x16xi1>
    %c11_i32_23 = arith.constant 11 : i32
    %72 = vector.broadcast %c11_i32_23 : i32 to vector<64x16xi32>
    %73 = arith.cmpi slt, %63, %72 : vector<64x16xi32>
    %74 = arith.andi %71, %73 : vector<64x16xi1>
    %75 = arith.subf %0, %1 : vector<64x16xf32>
    %76 = math.absf %75 : vector<64x16xf32>
    %cst_24 = arith.constant dense<0.000000e+00> : vector<16xf32>
    %77 = vector.multi_reduction <add>, %76, %cst_24 [0] : vector<64x16xf32> to vector<16xf32>
    %78 = vector.shape_cast %77 : vector<16xf32> to vector<1x16xf32>
    %cst_25 = arith.constant 0.000000e+00 : f32
    %79 = vector.broadcast %cst_25 : f32 to vector<64x16xf32>
    %80 = arith.select %74, %45, %79 : vector<64x16xi1>, vector<64x16xf32>
    %cst_26 = arith.constant dense<0.000000e+00> : vector<16xf32>
    %81 = vector.multi_reduction <add>, %80, %cst_26 [0] : vector<64x16xf32> to vector<16xf32>
    %82 = vector.shape_cast %81 : vector<16xf32> to vector<1x16xf32>
    %83 = vector.shape_cast %78 : vector<1x16xf32> to vector<1x1x16xf32>
    %c0_27 = arith.constant 0 : index
    %c0_28 = arith.constant 0 : index
    %c0_29 = arith.constant 0 : index
    %84 = vector.load %arg6[%c0_27, %c0_28, %c0_29] : memref<1x1x16xf32, #tpu.memory_space<vmem>>, vector<1x1x16xf32>
    tpu.vector_store %arg6[%c0_27, %c0_28, %c0_29], %83 {strides = array<i32>} : memref<1x1x16xf32, #tpu.memory_space<vmem>>, vector<1x1x16xf32>,
    %85 = vector.shape_cast %82 : vector<1x16xf32> to vector<1x1x16xf32>
    %c0_30 = arith.constant 0 : index
    %c0_31 = arith.constant 0 : index
    %c0_32 = arith.constant 0 : index
    %86 = vector.load %arg7[%c0_30, %c0_31, %c0_32] : memref<1x1x16xf32, #tpu.memory_space<vmem>>, vector<1x1x16xf32>
    tpu.vector_store %arg7[%c0_30, %c0_31, %c0_32], %85 {strides = array<i32>} : memref<1x1x16xf32, #tpu.memory_space<vmem>>, vector<1x1x16xf32>,
    return
  }
  func.func @transform_0(%arg0: i32) -> i32 {
    %c0_i32 = arith.constant 0 : i32
    %c0_i32_0 = arith.constant 0 : i32
    return %c0_i32 : i32
  }
  func.func @transform_1(%arg0: i32) -> (i32, i32) {
    %c0_i32 = arith.constant 0 : i32
    %c0_i32_0 = arith.constant 0 : i32
    %c0_i32_1 = arith.constant 0 : i32
    return %c0_i32, %c0_i32_0 : i32, i32
  }
  func.func @transform_2(%arg0: i32) -> (i32, i32) {
    %c0_i32 = arith.constant 0 : i32
    %c0_i32_0 = arith.constant 0 : i32
    %c0_i32_1 = arith.constant 0 : i32
    return %c0_i32, %c0_i32_0 : i32, i32
  }
  func.func @transform_3(%arg0: i32) -> (i32, i32) {
    %c0_i32 = arith.constant 0 : i32
    %c0_i32_0 = arith.constant 0 : i32
    return %arg0, %c0_i32 : i32, i32
  }
  func.func @transform_4(%arg0: i32) -> (i32, i32) {
    %c0_i32 = arith.constant 0 : i32
    %c0_i32_0 = arith.constant 0 : i32
    return %arg0, %c0_i32 : i32, i32
  }
  func.func @transform_5(%arg0: i32) -> (i32, i32, i32) {
    %c0_i32 = arith.constant 0 : i32
    %c0_i32_0 = arith.constant 0 : i32
    %c0_i32_1 = arith.constant 0 : i32
    return %arg0, %c0_i32, %c0_i32_0 : i32, i32, i32
  }
  func.func @transform_6(%arg0: i32) -> (i32, i32, i32) {
    %c0_i32 = arith.constant 0 : i32
    %c0_i32_0 = arith.constant 0 : i32
    %c0_i32_1 = arith.constant 0 : i32
    return %arg0, %c0_i32, %c0_i32_0 : i32, i32, i32
  }
}

</mosaic_0001>

<bundles_post_ra>
// kernel: tpu_custom_call.1
= control target key start
LH: loop header
LB: loop body
LE: loop exit
PB: predicated region body
PF: predicated region fallthrough
CT: control target
= control target key end

     0   :  { %12 = vsyncpa [#allocation4], 0  ;;  %s3645_s0 = inlined_call_operand.vmem [shape: f32[2], index: 0, kind: input, shape index: {}]   ;;  %s3646_s1 = inlined_call_operand.vmem [shape: f32[16,16], index: 1, kind: input, shape index: {}]   ;;  %s3647_s2 = inlined_call_operand.vmem [shape: f32[64,64], index: 2, kind: input, shape index: {}]   ;;  %s3648_s3 = inlined_call_operand.vmem [shape: f32[128,16], index: 3, kind: input, shape index: {}]   ;;  %s3649_s4 = inlined_call_operand.vmem [shape: f32[128,16], index: 4, kind: input, shape index: {}]   ;;  %s3650_s5 = inlined_call_operand.hbm [shape: f32[2,1,16], index: 5, kind: output, shape index: {0}]   ;;  %s3651_s6 = inlined_call_operand.hbm [shape: f32[2,1,16], index: 6, kind: output, shape index: {1}]  }
   0x1   :  { %13 = vsyncpa [#allocation3], 0 }
   0x2   :  { %15 = vsyncpa [#allocation3 + $0x1], 0 }
   0x3   :  { %16 = vsyncpa [#allocation7], 0 }
   0x4   :  { %18 = vsyncpa [#allocation7 + $0x1], 0  ;;  %s2831_s21 = smov 0   ;;  %s2833_s22 = smov 0  }
   0x5   :  { %s2835_s23 = smov 0   ;;  %s2837_s24 = smov 0  }
   0x6 LB: > { %s2852_s25 = sadd.s32 4294967295, %s2791_s24   ;;  %s2054_s26 = sadd.s32 4294967294, %s2791_s24   ;;  %s2791_s24 = sphi %s2837_s24, %s3697_s24   ;;  %s2787_s23 = sphi %s2835_s23, %s3696_s23   ;;  %s2783_s22 = sphi %s2833_s22, %s3695_s22   ;;  %s2779_s21 = sphi %s2831_s21, %s3694_s21  }
   0x7   : > { %s2856_s27 = sadd.s32 1, %s2791_s24   ;;  %s146_s28 = sadd.s32 1, %s2787_s23 }
   0x8   : > { %s143_s29 = ssub.s32 %s2791_s24, %s2856_s27  ;;  %p156_p0 = scmp.ne.s32.totalorder %s2787_s23, %s2783_s22 }
   0x9   : > { %p144_p1 = scmp.eq.s32.totalorder %s143_s29, 0  ;;  %p157_p2 = scmp.eq.s32.totalorder %s2852_s25, 1 }
   0xa   : > { %p162_p3 = scmp.ne.s32.totalorder %s2783_s22, %s2779_s21  ;;  %p163_p4 = scmp.eq.s32.totalorder %s2054_s26, 1 }
   0xb   : > { %s2867_s30 = scalar_select %p144_p1, %s2787_s23, %s146_s28  }
   0xc   : > { %p2869_p5 = por %p157_p2, %p156_p0  ;;  %p2873_p6 = por %p163_p4, %p162_p3 }
   0xd   : > { %p2055_p7 = scmp.ge.s32.totalorder %s2791_s24, 1  ;;  %p196_p8 = scmp.lt.s32.totalorder %s2791_s24, 3 }
   0xe   : > { %p2626_p9 = scmp.eq.s32.totalorder %s2852_s25, 0  ;;  %s209_s12 = sshll.u32 %s3645_s0, 4  ;;  %s210_s12 = int_to_ptr.vmem [resolvable:$true] %s209_s12 }
   0xf   : > { %p2880_p10 = pnand %p2055_p7, %p196_p8  ;;  %s2678_s13 = scalar_lea.vmem %s210_s12, 16 }
  0x10   : > { %p2679_p13 = scmp.ne.s32.totalorder %s210_s12, %s2678_s13  ;;  %p2686_p3 = scmp.lt.s32.totalorder %s210_s12, %s210_s12 }
  0x11   : > { %p2615_p11 = pneg %p2880_p10  ;;  %p2687_p4 = scmp.lt.s32.totalorder %s2678_s13, %s2678_s13 }
  0x13   : > { %p2616_p12 = pnand %p2626_p9, %p2615_p11  ;;  %p2688_p7 = por %p2687_p4, %p2686_p3 }
  0x15   : > { %p2680_p0 = pneg %p2616_p12 }
  0x17   : > { %p2681_p1 = pnand %p2680_p0, %p2679_p13 }
  0x19   : > { %p2682_p2 = pneg %p2681_p1 }
  0x1b   : > { %p2689_p8 = pnand %p2688_p7, %p2682_p2 }
  0x1d   : > { %2692 = shalt.err (!%p2689_p8)
}
  0x1e   : > { %s2793_s14 = smov [#allocation2]   ;;  %246 = sbr.rel (%p2880_p10) target bundleno = 608 (0x260), region = 40 }
  0x1f   : > { %2618 = dma.vmem_to_smem (!%p2616_p12), %s210_s12, 16, %s2793_s14, [#allocation4]  }
  0x25   : > { %2766 = dma.done.wait (%p2626_p9), [#allocation4], 16  }
  0x26   : > { %2768 = vsyncadd (%p2626_p9), [#allocation4], 4294967280 }
  0x27   : > { %252 = sfence }
  0x28   : > { %v315_v0 = vld [vmem:[%s3646_s1] sm:$0xff]  ;;  %v316_v1 = vld [vmem:[%s3646_s1 + $0x8] sm:$0xff]  ;;  %s2060_s19 = sshll.u32 %s2852_s25, 3  ;;  %vm325_vm0 = vcmask 130048   ;;  %vm455_vm1 = vcmask 523264   ;;  %s3206_s13 = sand.u32 1, %s2783_s22  }
  0x29   : > { %v2904_v2 = vpack.c.bf16 %v316_v1, %v315_v0  ;;  %p286_p10 = scmp.lt.s32.totalorder %s2060_s19, 15  ;;  %s2145_s14 = sshll.u32 %s2852_s25, 4  ;;  %vm1914_vm2 = vcmask 122880  }
  0x2a   : > { %s278_s15 = scalar_lea.vmem [#allocation5], %s3206_s13  ;;  %s2794_s28 = smov [#allocation5]  }
  0x2b   : > { %2500 = vmatprep.subr.bf16.mxu0 %v2904_v2  ;;  %s3699_s19 = smov (!%p286_p10, %s2060_s19), 15  ;;  %s1934_s16 = sshll.u32 %s278_s15, 4  ;;  %s3218_s16 = int_to_ptr.vmem [resolvable:$true] %s1934_s16 }
  0x2c   : > { %2502 = vmatpush3.bf16.msra.mxu0 %v2904_v2  ;;  %s2061_s20 = sshll.u32 %s3699_s19, 3  ;;  %s3216_s19 = scalar_lea.hbm %s3650_s5, %s2145_s14 }
  0x2d   : > { %2520 = vmatprep.subr.bf16.mxu0 %v2904_v2  ;;  %s289_s29 = scalar_lea.vmem %s3648_s3, %s2061_s20  ;;  %s295_s11 = scalar_lea.vmem %s3649_s4, %s2061_s20 }
  0x2e   : > { %v2915_v3 = vld [vmem:[%s289_s29] sm:$0xff]  ;;  %v2917_v4 = vld [vmem:[%s289_s29 + $0x8] sm:$0xff]  ;;  %v2925_v7 = vld [vmem:[%s289_s29 + $0x10] sm:$0xff]  ;;  %s1918_s20 = scalar_lea.sflag [#allocation3], %s3206_s13  ;;  %s2693_s26 = scalar_lea.vmem %s3218_s16, 16 }
  0x2f   : > { %v2919_v5 = vld [vmem:[%s295_s11 + $0x8] sm:$0xff]  ;;  %2283 = vmatprep.mubr.msk.f32.mxu0 %vm325_vm0, %v2915_v3  ;;  %v2927_v8 = vld [vmem:[%s289_s29 + $0x18] sm:$0xff]  ;;  %v2931_v9 = vld [vmem:[%s289_s29 + $0x20] sm:$0xff]  ;;  %v819_v50 = vmul.f32 %v2915_v3, %v2915_v3  ;;  %v820_v51 = vmul.f32 %v2917_v4, %v2917_v4  ;;  %v821_v52 = vmul.f32 %v2925_v7, %v2925_v7  ;;  %p2694_p9 = scmp.ne.s32.totalorder %s3218_s16, %s2693_s26 }
  0x30   : > { %v1849_v6 = vsub.f32 %v2917_v4, %v2919_v5  ;;  %2284 = vmatmul.mubr.msk.f32.vlgmr.msra.gmra.mrb[0].mxu0 %vm325_vm0, %v2917_v4  ;;  %v2933_v10 = vld [vmem:[%s289_s29 + $0x28] sm:$0xff]  ;;  %v2935_v11 = vld [vmem:[%s289_s29 + $0x30] sm:$0xff]  ;;  %v2940_v13 = vld [vmem:[%s295_s11] sm:$0xff]  ;;  %v822_v53 = vmul.f32 %v2927_v8, %v2927_v8  ;;  %v823_v54 = vmul.f32 %v2931_v9, %v2931_v9  ;;  %v1078_v59 = vmul.f32 %v2919_v5, %v2919_v5 }
  0x31   : > { %2522 = vmatpush3.bf16.msra.mxu0 %v2904_v2  ;;  %2286 = vmatprep.mubr.msk.f32.mxu0 %vm325_vm0, %v2925_v7  ;;  %v2942_v14 = vld [vmem:[%s295_s11 + $0x10] sm:$0xff]  ;;  %v2944_v15 = vld [vmem:[%s295_s11 + $0x18] sm:$0xff]  ;;  %v1848_v16 = vsub.f32 %v2915_v3, %v2940_v13  ;;  %v2953_v19 = vld [vmem:[%s295_s11 + $0x20] sm:$0xff]  ;;  %v824_v55 = vmul.f32 %v2933_v10, %v2933_v10  ;;  %v825_v56 = vmul.f32 %v2935_v11, %v2935_v11  ;;  %p2695_p11 = pnand %p2694_p9, %p2869_p5 }
  0x32   : > { %v1857_v12 = vand.u32 2147483647, %v1849_v6  ;;  %2540 = vmatprep.subr.bf16.mxu0 %v2904_v2  ;;  %v1850_v17 = vsub.f32 %v2925_v7, %v2942_v14  ;;  %v1851_v18 = vsub.f32 %v2927_v8, %v2944_v15  ;;  %v2955_v20 = vld [vmem:[%s295_s11 + $0x28] sm:$0xff]  ;;  %v2957_v21 = vld [vmem:[%s295_s11 + $0x30] sm:$0xff]  ;;  %v2960_v23 = vld [vmem:[%s289_s29 + $0x38] sm:$0xff]  ;;  %v1852_v24 = vsub.f32 %v2931_v9, %v2953_v19  ;;  %s2697_s29 = sshll.u32 %s2794_s28, 4  ;;  %s2698_s29 = int_to_ptr.vmem [resolvable:$false] %s2697_s29 }
  0x33   : > { %v1853_v25 = vsub.f32 %v2933_v10, %v2955_v20  ;;  %v1854_v26 = vsub.f32 %v2935_v11, %v2957_v21  ;;  %v2968_v27 = vld [vmem:[%s295_s11 + $0x38] sm:$0xff]  ;;  %v1856_v28 = vand.u32 2147483647, %v1848_v16  ;;  %v826_v57 = vmul.f32 %v2960_v23, %v2960_v23  ;;  %p2696_p12 = pneg %p2695_p11  ;;  %s2699_s9 = scalar_lea.vmem %s2698_s29, 32 }
  0x34   : > { %v1865_v22 = vsel %vm325_vm0, %v1857_v12, 0.0  ;;  %2287 = vmatmul.mubr.msk.f32.gmra.mrb[2].mxu0 %vm325_vm0, %v2927_v8  ;;  %v1858_v29 = vand.u32 2147483647, %v1850_v17  ;;  %v1859_v30 = vand.u32 2147483647, %v1851_v18  ;;  %v1855_v31 = vsub.f32 %v2960_v23, %v2968_v27  ;;  %p2700_p13 = scmp.lt.s32.totalorder %s3218_s16, %s2698_s29  ;;  %p2701_p0 = scmp.lt.s32.totalorder %s2699_s9, %s2693_s26 }
  0x35   : > { %2289 = vmatprep.mubr.msk.f32.mxu0 %vm325_vm0, %v2931_v9  ;;  %v1864_v32 = vsel %vm325_vm0, %v1856_v28, 0.0  ;;  %v1860_v34 = vand.u32 2147483647, %v1852_v24  ;;  %v1861_v37 = vand.u32 2147483647, %v1853_v25  ;;  %v1077_v58 = vmul.f32 %v2940_v13, %v2940_v13  ;;  %v3096_v25 = vld [vmem:[%s3647_s2 + $0x8] sm:$0xff] }
  0x36   : > { %v1867_v33 = vsel %vm325_vm0, %v1858_v29, 0.0  ;;  %v1866_v35 = vadd.f32 %v1865_v22, %v1864_v32  ;;  %v1869_v36 = vsel %vm325_vm0, %v1859_v30, 0.0  ;;  %v1862_v40 = vand.u32 2147483647, %v1854_v26  ;;  %v3110_v30 = vld [vmem:[%s3647_s2 + $0x18] sm:$0xff]  ;;  %v3115_v32 = vld [vmem:[%s3647_s2 + $0x20] sm:$0xff]  ;;  %p2702_p1 = por %p2701_p0, %p2700_p13 }
  0x37   : > { %v1871_v39 = vsel %vm325_vm0, %v1860_v34, 0.0  ;;  %v1873_v42 = vsel %vm325_vm0, %v1861_v37, 0.0  ;;  %v1863_v43 = vand.u32 2147483647, %v1855_v31  ;;  %v1079_v60 = vmul.f32 %v2942_v14, %v2942_v14  ;;  %v3129_v37 = vld [vmem:[%s3647_s2 + $0x30] sm:$0xff] }
  0x38   : > { %2290 = vmatmul.mubr.msk.f32.gmra.mrb[4].mxu0 %vm325_vm0, %v2933_v10  ;;  %v1868_v38 = vadd.f32 %v1867_v33, %v1866_v35  ;;  %v1875_v45 = vsel %vm325_vm0, %v1862_v40, 0.0  ;;  %v1080_v61 = vmul.f32 %v2944_v15, %v2944_v15  ;;  %v1081_v62 = vmul.f32 %v2953_v19, %v2953_v19  ;;  %v3124_v35 = vld [vmem:[%s3647_s2 + $0x28] sm:$0xff]  ;;  %v3138_v40 = vld [vmem:[%s3647_s2 + $0x38] sm:$0xff]  ;;  %p2703_p2 = pnand %p2702_p1, %p2696_p12 }
  0x39   : > { %2292 = vmatprep.mubr.msk.f32.mxu0 %vm325_vm0, %v2935_v11  ;;  %v1877_v47 = vsel %vm325_vm0, %v1863_v43, 0.0  ;;  %v1082_v63 = vmul.f32 %v2955_v20, %v2955_v20  ;;  %v1083_v0 = vmul.f32 %v2957_v21, %v2957_v21  ;;  %v1084_v1 = vmul.f32 %v2968_v27, %v2968_v27 }
  0x3a   : > { %v1870_v41 = vadd.f32 %v1869_v36, %v1868_v38  ;;  %v1336_v6 = vmul.f32 %v2919_v5, %v2917_v4  ;;  %v1337_v12 = vmul.f32 %v2942_v14, %v2925_v7  ;;  %v1338_v16 = vmul.f32 %v2944_v15, %v2927_v8  ;;  %v3087_v8 = vld [vmem:[%s3647_s2] sm:$0xff] }
  0x3b   : > { %v1340_v4 = vmul.f32 %v2955_v20, %v2933_v10  ;;  %v1342_v7 = vmul.f32 %v2968_v27, %v2960_v23  ;;  %2311 = vmatprep.mubr.msk.f32.mxu1 %vm455_vm1, %v3087_v8 }
  0x3c   : > { %2293 = vmatmul.mubr.msk.f32.gmra.mrb[6].mxu0 %vm325_vm0, %v2960_v23  ;;  %v1872_v44 = vadd.f32 %v1871_v39, %v1870_v41 }
  0x3d   : > { %2327 = vmatprep.mubr.msk.f32.mxu0 %vm325_vm0, %v2940_v13 }
  0x3e   : > { %v1874_v46 = vadd.f32 %v1873_v42, %v1872_v44 }
  0x40   : > { %2328 = vmatmul.mubr.msk.f32.vlgmr.msra.gmra.mrb[8].mxu0 %vm325_vm0, %v2919_v5  ;;  %v1876_v48 = vadd.f32 %v1875_v45, %v1874_v46  ;;  %v1341_v5 = vmul.f32 %v2957_v21, %v2935_v11 }
  0x41   : > { %2542 = vmatpush3.bf16.msra.mxu0 %v2904_v2  ;;  %2330 = vmatprep.mubr.msk.f32.mxu0 %vm325_vm0, %v2942_v14 }
  0x42   : > { %2560 = vmatprep.subr.bf16.mxu0 %v2904_v2  ;;  %v2997_v49 = vadd.f32 %v1877_v47, %v1876_v48 }
  0x44   : > { %2331 = vmatmul.mubr.msk.f32.gmra.mrb[10].mxu0 %vm325_vm0, %v2944_v15 }
  0x45   : > { %2333 = vmatprep.mubr.msk.f32.mxu0 %vm325_vm0, %v2953_v19 }
  0x48   : > { %2334 = vmatmul.mubr.msk.f32.gmra.mrb[12].mxu0 %vm325_vm0, %v2955_v20 }
  0x49   : > { %2336 = vmatprep.mubr.msk.f32.mxu0 %vm325_vm0, %v2957_v21 }
  0x4c   : > { %2337 = vmatmul.mubr.msk.f32.gmra.mrb[14].mxu0 %vm325_vm0, %v2968_v27  ;;  %v3101_v27 = vld [vmem:[%s3647_s2 + $0x10] sm:$0xff] }
  0x4d   : > { %2371 = vmatprep.mubr.msk.f32.mxu0 %vm325_vm0, %v819_v50 }
  0x50   : > { %2372 = vmatmul.mubr.msk.f32.vlgmr.msra.gmra.mrb[16].mxu0 %vm325_vm0, %v820_v51 }
  0x51   : > { %2562 = vmatpush3.bf16.msra.mxu0 %v2904_v2  ;;  %2374 = vmatprep.mubr.msk.f32.mxu0 %vm325_vm0, %v821_v52 }
  0x52   : > { %2580 = vmatprep.subr.bf16.mxu0 %v2904_v2 }
  0x54   : > { %2375 = vmatmul.mubr.msk.f32.gmra.mrb[18].mxu0 %vm325_vm0, %v822_v53 }
  0x55   : > { %2377 = vmatprep.mubr.msk.f32.mxu0 %vm325_vm0, %v823_v54 }
  0x58   : > { %2378 = vmatmul.mubr.msk.f32.gmra.mrb[20].mxu0 %vm325_vm0, %v824_v55 }
  0x59   : > { %2380 = vmatprep.mubr.msk.f32.mxu0 %vm325_vm0, %v825_v56 }
  0x5c   : > { %2381 = vmatmul.mubr.msk.f32.gmra.mrb[22].mxu0 %vm325_vm0, %v826_v57 }
  0x5d   : > { %2415 = vmatprep.mubr.msk.f32.mxu0 %vm325_vm0, %v1077_v58 }
  0x60   : > { %2416 = vmatmul.mubr.msk.f32.vlgmr.msra.gmra.mrb[24].mxu0 %vm325_vm0, %v1078_v59 }
  0x61   : > { %2582 = vmatpush3.bf16.msra.mxu0 %v2904_v2  ;;  %2418 = vmatprep.mubr.msk.f32.mxu0 %vm325_vm0, %v1079_v60  ;;  %v1335_v2 = vmul.f32 %v2940_v13, %v2915_v3  ;;  %v1339_v3 = vmul.f32 %v2953_v19, %v2931_v9 }
  0x64   : > { %2419 = vmatmul.mubr.msk.f32.gmra.mrb[26].mxu0 %vm325_vm0, %v1080_v61 }
  0x65   : > { %2421 = vmatprep.mubr.msk.f32.mxu0 %vm325_vm0, %v1081_v62 }
  0x68   : > { %2422 = vmatmul.mubr.msk.f32.gmra.mrb[28].mxu0 %vm325_vm0, %v1082_v63 }
  0x69   : > { %2424 = vmatprep.mubr.msk.f32.mxu0 %vm325_vm0, %v1083_v0 }
  0x6c   : > { %2425 = vmatmul.mubr.msk.f32.gmra.mrb[30].mxu0 %vm325_vm0, %v1084_v1 }
  0x6d   : > { %2459 = vmatprep.mubr.msk.f32.mxu0 %vm325_vm0, %v1335_v2 }
  0x70   : > { %2460 = vmatmul.mubr.msk.f32.vlgmr.msra.gmra.mrb[32].mxu0 %vm325_vm0, %v1336_v6 }
  0x71   : > { %2462 = vmatprep.mubr.msk.f32.mxu0 %vm325_vm0, %v1337_v12 }
  0x74   : > { %2463 = vmatmul.mubr.msk.f32.gmra.mrb[34].mxu0 %vm325_vm0, %v1338_v16 }
  0x75   : > { %2465 = vmatprep.mubr.msk.f32.mxu0 %vm325_vm0, %v1339_v3 }
  0x78   : > { %2466 = vmatmul.mubr.msk.f32.gmra.mrb[36].mxu0 %vm325_vm0, %v1340_v4 }
  0x79   : > { %2468 = vmatprep.mubr.msk.f32.mxu0 %vm325_vm0, %v1341_v5 }
  0x7c   : > { %2469 = vmatmul.mubr.msk.f32.gmra.mrb[38].mxu0 %vm325_vm0, %v1342_v7 }
  0x7d   : > { %2487 = vmatprep.mubr.msk.f32.mxu0 %vm455_vm1, %v3087_v8 }
 0x103   : > { %v2285_v9 = vpop.f32.mrb[0].mxu0 }
 0x104   : > { %v416_v10 = vpop.f32.mrb[1].mxu0 }
 0x105   : > { %v2503_v11 = vpack.c.bf16 %v2285_v9, %v416_v10 }
 0x107   : > { %v2288_v13 = vpop.f32.mrb[2].mxu0  ;;  %2504 = vmatprep.subr.bf16.mxu1 %v2503_v11 }
 0x108   : > { %v426_v14 = vpop.f32.mrb[3].mxu0  ;;  %2506 = vmatpush3.bf16.msra.mxu1 %v2503_v11 }
 0x109   : > { %v2507_v15 = vpack.c.bf16 %v2288_v13, %v426_v14  ;;  %v1879_v14 = vrot.slane %v2997_v49, 4 }
 0x10b   : > { %v2291_v17 = vpop.f32.mrb[4].mxu0  ;;  %2508 = vmatprep.subr.bf16.mxu1 %v2507_v15 }
 0x10c   : > { %v436_v18 = vpop.f32.mrb[5].mxu0  ;;  %2510 = vmatpush3.bf16.msra.mxu1 %v2507_v15  ;;  %v1880_v15 = vadd.f32 %v1879_v14, %v2997_v49 }
 0x10d   : > { %v2511_v19 = vpack.c.bf16 %v2291_v17, %v436_v18 }
 0x10e   : > { %v1881_v17 = vrot.slane %v1880_v15, 2 }
 0x10f   : > { %v2294_v20 = vpop.f32.mrb[6].mxu0  ;;  %2512 = vmatprep.subr.bf16.mxu1 %v2511_v19 }
 0x110   : > { %v446_v21 = vpop.f32.mrb[7].mxu0  ;;  %2514 = vmatpush3.bf16.msra.mxu1 %v2511_v19  ;;  %v1882_v18 = vadd.f32 %v1881_v17, %v1880_v15 }
 0x111   : > { %v2515_v22 = vpack.c.bf16 %v2294_v20, %v446_v21 }
 0x112   : > { %v1883_v19 = vrot.slane %v1882_v18, 1 }
 0x113   : > { %2516 = vmatprep.subr.bf16.mxu1 %v2515_v22  ;;  %v2329_v23 = vpop.f32.mrb[8].mxu0 }
 0x114   : > { %2518 = vmatpush3.bf16.msra.mxu1 %v2515_v22  ;;  %v675_v24 = vpop.f32.mrb[9].mxu0  ;;  %v1884_v20 = vadd.f32 %v1883_v19, %v1882_v18 }
 0x115   : > { %v2523_v26 = vpack.c.bf16 %v2329_v23, %v675_v24 }
 0x116   : > { %1915 = vst.msk [vmem:[%s278_s15] sm:$0x1] %vm1914_vm2, %v1884_v20 }
 0x117   : > { %2312 = vmatmul.mubr.msk.f32.vlgmr.msra.gmra.mrb[0].mxu1 %vm455_vm1, %v3096_v25  ;;  %v2332_v28 = vpop.f32.mrb[10].mxu0  ;;  %2524 = vmatprep.subr.bf16.mxu1 %v2523_v26 }
 0x118   : > { %v685_v29 = vpop.f32.mrb[11].mxu0  ;;  %2526 = vmatpush3.bf16.msra.mxu1 %v2523_v26  ;;  %2314 = vmatprep.mubr.msk.f32.mxu1 %vm455_vm1, %v3101_v27 }
 0x119   : > { %v2527_v31 = vpack.c.bf16 %v2332_v28, %v685_v29 }
 0x11b   : > { %2315 = vmatmul.mubr.msk.f32.gmra.mrb[2].mxu1 %vm455_vm1, %v3110_v30  ;;  %v2335_v33 = vpop.f32.mrb[12].mxu0  ;;  %2528 = vmatprep.subr.bf16.mxu1 %v2527_v31 }
 0x11c   : > { %v695_v34 = vpop.f32.mrb[13].mxu0  ;;  %2530 = vmatpush3.bf16.msra.mxu1 %v2527_v31  ;;  %2317 = vmatprep.mubr.msk.f32.mxu1 %vm455_vm1, %v3115_v32 }
 0x11d   : > { %v2531_v36 = vpack.c.bf16 %v2335_v33, %v695_v34 }
 0x11f   : > { %2318 = vmatmul.mubr.msk.f32.gmra.mrb[4].mxu1 %vm455_vm1, %v3124_v35  ;;  %v2338_v38 = vpop.f32.mrb[14].mxu0  ;;  %2532 = vmatprep.subr.bf16.mxu1 %v2531_v36 }
 0x120   : > { %v705_v39 = vpop.f32.mrb[15].mxu0  ;;  %2534 = vmatpush3.bf16.msra.mxu1 %v2531_v36  ;;  %2320 = vmatprep.mubr.msk.f32.mxu1 %vm455_vm1, %v3129_v37 }
 0x121   : > { %v2535_v41 = vpack.c.bf16 %v2338_v38, %v705_v39 }
 0x123   : > { %2321 = vmatmul.mubr.msk.f32.gmra.mrb[6].mxu1 %vm455_vm1, %v3138_v40  ;;  %2536 = vmatprep.subr.bf16.mxu1 %v2535_v41  ;;  %v2373_v42 = vpop.f32.mrb[16].mxu0 }
 0x124   : > { %2538 = vmatpush3.bf16.msra.mxu1 %v2535_v41  ;;  %v917_v43 = vpop.f32.mrb[17].mxu0  ;;  %2355 = vmatprep.mubr.msk.f32.mxu1 %vm455_vm1, %v3087_v8 }
 0x125   : > { %v2543_v44 = vpack.c.bf16 %v2373_v42, %v917_v43 }
 0x127   : > { %2356 = vmatmul.mubr.msk.f32.vlgmr.msra.gmra.mrb[8].mxu1 %vm455_vm1, %v3096_v25  ;;  %v2376_v45 = vpop.f32.mrb[18].mxu0  ;;  %2544 = vmatprep.subr.bf16.mxu1 %v2543_v44 }
 0x128   : > { %v927_v46 = vpop.f32.mrb[19].mxu0  ;;  %2546 = vmatpush3.bf16.msra.mxu1 %v2543_v44  ;;  %2358 = vmatprep.mubr.msk.f32.mxu1 %vm455_vm1, %v3101_v27 }
 0x129   : > { %v2547_v47 = vpack.c.bf16 %v2376_v45, %v927_v46 }
 0x12b   : > { %2359 = vmatmul.mubr.msk.f32.gmra.mrb[10].mxu1 %vm455_vm1, %v3110_v30  ;;  %v2379_v48 = vpop.f32.mrb[20].mxu0  ;;  %2548 = vmatprep.subr.bf16.mxu1 %v2547_v47 }
 0x12c   : > { %v937_v50 = vpop.f32.mrb[21].mxu0  ;;  %2550 = vmatpush3.bf16.msra.mxu1 %v2547_v47  ;;  %2361 = vmatprep.mubr.msk.f32.mxu1 %vm455_vm1, %v3115_v32 }
 0x12d   : > { %v2551_v51 = vpack.c.bf16 %v2379_v48, %v937_v50 }
 0x12f   : > { %2362 = vmatmul.mubr.msk.f32.gmra.mrb[12].mxu1 %vm455_vm1, %v3124_v35  ;;  %v2382_v52 = vpop.f32.mrb[22].mxu0  ;;  %2552 = vmatprep.subr.bf16.mxu1 %v2551_v51 }
 0x130   : > { %v947_v53 = vpop.f32.mrb[23].mxu0  ;;  %2554 = vmatpush3.bf16.msra.mxu1 %v2551_v51  ;;  %2364 = vmatprep.mubr.msk.f32.mxu1 %vm455_vm1, %v3129_v37 }
 0x131   : > { %v2555_v54 = vpack.c.bf16 %v2382_v52, %v947_v53 }
 0x133   : > { %2365 = vmatmul.mubr.msk.f32.gmra.mrb[14].mxu1 %vm455_vm1, %v3138_v40  ;;  %2556 = vmatprep.subr.bf16.mxu1 %v2555_v54  ;;  %v2417_v55 = vpop.f32.mrb[24].mxu0 }
 0x134   : > { %2558 = vmatpush3.bf16.msra.mxu1 %v2555_v54  ;;  %v1175_v56 = vpop.f32.mrb[25].mxu0  ;;  %2399 = vmatprep.mubr.msk.f32.mxu1 %vm455_vm1, %v3087_v8 }
 0x135   : > { %v2563_v57 = vpack.c.bf16 %v2417_v55, %v1175_v56 }
 0x137   : > { %2400 = vmatmul.mubr.msk.f32.vlgmr.msra.gmra.mrb[16].mxu1 %vm455_vm1, %v3096_v25  ;;  %v2420_v58 = vpop.f32.mrb[26].mxu0  ;;  %2564 = vmatprep.subr.bf16.mxu1 %v2563_v57 }
 0x138   : > { %v1185_v59 = vpop.f32.mrb[27].mxu0  ;;  %2566 = vmatpush3.bf16.msra.mxu1 %v2563_v57  ;;  %2402 = vmatprep.mubr.msk.f32.mxu1 %vm455_vm1, %v3101_v27 }
 0x139   : > { %v2567_v60 = vpack.c.bf16 %v2420_v58, %v1185_v59 }
 0x13b   : > { %2403 = vmatmul.mubr.msk.f32.gmra.mrb[18].mxu1 %vm455_vm1, %v3110_v30  ;;  %v2423_v61 = vpop.f32.mrb[28].mxu0  ;;  %2568 = vmatprep.subr.bf16.mxu1 %v2567_v60 }
 0x13c   : > { %v1195_v62 = vpop.f32.mrb[29].mxu0  ;;  %2570 = vmatpush3.bf16.msra.mxu1 %v2567_v60  ;;  %2405 = vmatprep.mubr.msk.f32.mxu1 %vm455_vm1, %v3115_v32 }
 0x13d   : > { %v2571_v63 = vpack.c.bf16 %v2423_v61, %v1195_v62 }
 0x13f   : > { %2406 = vmatmul.mubr.msk.f32.gmra.mrb[20].mxu1 %vm455_vm1, %v3124_v35  ;;  %v2426_v0 = vpop.f32.mrb[30].mxu0  ;;  %2572 = vmatprep.subr.bf16.mxu1 %v2571_v63 }
 0x140   : > { %v1205_v1 = vpop.f32.mrb[31].mxu0  ;;  %2574 = vmatpush3.bf16.msra.mxu1 %v2571_v63  ;;  %2408 = vmatprep.mubr.msk.f32.mxu1 %vm455_vm1, %v3129_v37 }
 0x141   : > { %v2575_v2 = vpack.c.bf16 %v2426_v0, %v1205_v1 }
 0x143   : > { %2409 = vmatmul.mubr.msk.f32.gmra.mrb[22].mxu1 %vm455_vm1, %v3138_v40  ;;  %2576 = vmatprep.subr.bf16.mxu1 %v2575_v2  ;;  %v2461_v6 = vpop.f32.mrb[32].mxu0 }
 0x144   : > { %2578 = vmatpush3.bf16.msra.mxu1 %v2575_v2  ;;  %v1433_v12 = vpop.f32.mrb[33].mxu0  ;;  %2443 = vmatprep.mubr.msk.f32.mxu1 %vm455_vm1, %v3087_v8 }
 0x145   : > { %v2583_v16 = vpack.c.bf16 %v2461_v6, %v1433_v12 }
 0x147   : > { %2444 = vmatmul.mubr.msk.f32.vlgmr.msra.gmra.mrb[24].mxu1 %vm455_vm1, %v3096_v25  ;;  %v2464_v3 = vpop.f32.mrb[34].mxu0  ;;  %2584 = vmatprep.subr.bf16.mxu0 %v2583_v16 }
 0x148   : > { %2599 = vmatprep.subr.bf16.mxu1 %v2583_v16  ;;  %v1443_v4 = vpop.f32.mrb[35].mxu0  ;;  %2586 = vmatpush3.bf16.msra.mxu0 %v2583_v16 }
 0x149   : > { %v2587_v5 = vpack.c.bf16 %v2464_v3, %v1443_v4  ;;  %2603 = vmatpush3.bf16.msra.mxu1 %v2583_v16  ;;  %2446 = vmatprep.mubr.msk.f32.mxu1 %vm455_vm1, %v3101_v27 }
 0x14b   : > { %2447 = vmatmul.mubr.msk.f32.gmra.mrb[26].mxu1 %vm455_vm1, %v3110_v30  ;;  %v2467_v7 = vpop.f32.mrb[36].mxu0  ;;  %2588 = vmatprep.subr.bf16.mxu0 %v2587_v5 }
 0x14c   : > { %2600 = vmatprep.subr.bf16.mxu1 %v2587_v5  ;;  %v1453_v8 = vpop.f32.mrb[37].mxu0  ;;  %2590 = vmatpush3.bf16.msra.mxu0 %v2587_v5 }
 0x14d   : > { %v2591_v9 = vpack.c.bf16 %v2467_v7, %v1453_v8  ;;  %2604 = vmatpush3.bf16.msra.mxu1 %v2587_v5  ;;  %2449 = vmatprep.mubr.msk.f32.mxu1 %vm455_vm1, %v3115_v32 }
 0x14f   : > { %2450 = vmatmul.mubr.msk.f32.gmra.mrb[28].mxu1 %vm455_vm1, %v3124_v35  ;;  %v2470_v10 = vpop.f32.mrb[38].mxu0  ;;  %2592 = vmatprep.subr.bf16.mxu0 %v2591_v9 }
 0x150   : > { %2601 = vmatprep.subr.bf16.mxu1 %v2591_v9  ;;  %v1463_v11 = vpop.f32.mrb[39].mxu0  ;;  %2594 = vmatpush3.bf16.msra.mxu0 %v2591_v9 }
 0x151   : > { %v2595_v13 = vpack.c.bf16 %v2470_v10, %v1463_v11  ;;  %2605 = vmatpush3.bf16.msra.mxu1 %v2591_v9  ;;  %2452 = vmatprep.mubr.msk.f32.mxu1 %vm455_vm1, %v3129_v37 }
 0x153   : > { %2453 = vmatmul.mubr.msk.f32.gmra.mrb[30].mxu1 %vm455_vm1, %v3138_v40  ;;  %2596 = vmatprep.subr.bf16.mxu0 %v2595_v13 }
 0x154   : > { %2602 = vmatprep.subr.bf16.mxu1 %v2595_v13  ;;  %2598 = vmatpush3.bf16.msra.mxu0 %v2595_v13 }
 0x155   : > { %2606 = vmatpush3.bf16.msra.mxu1 %v2595_v13  ;;  %2490 = vmatprep.mubr.msk.f32.mxu1 %vm455_vm1, %v3101_v27 }
 0x157   : > { %2488 = vmatmul.mubr.msk.f32.vlgmr.msra.gmra.mrb[40].mxu0 %vm455_vm1, %v3096_v25 }
 0x158   : > { %2491 = vmatmul.mubr.msk.f32.vlgmr.msra.gmra.mrb[32].mxu1 %vm455_vm1, %v3110_v30 }
 0x159   : > { %2493 = vmatprep.mubr.msk.f32.mxu1 %vm455_vm1, %v3115_v32 }
 0x15c   : > { %2494 = vmatmul.mubr.msk.f32.gmra.mrb[34].mxu1 %vm455_vm1, %v3124_v35 }
 0x15d   : > { %2496 = vmatprep.mubr.msk.f32.mxu1 %vm455_vm1, %v3129_v37 }
 0x160   : > { %2497 = vmatmul.mubr.msk.f32.gmra.mrb[36].mxu1 %vm455_vm1, %v3138_v40 }
 0x161   : > { %2706 = shalt.err (!%p2703_p2)
}
 0x162   : > { %s2707_s10 = scalar_lea.hbm %s3216_s19, 16  ;;  %s2711_s15 = scalar_lea.hbm %s3650_s5, 32 }
 0x163   : > { %p2708_p3 = scmp.ne.s32.totalorder %s3216_s19, %s2707_s10  ;;  %p2712_p8 = scmp.lt.u32.totalorder %s3216_s19, %s3650_s5 }
 0x164   : > { %p2713_p10 = scmp.lt.u32.totalorder %s2711_s15, %s2707_s10  ;;  %p2715_p11 = scmp.lt.u32.totalorder %s2707_s10, %s3216_s19 }
 0x165   : > { %p2709_p4 = pnand %p2708_p3, %p2869_p5 }
 0x166   : > { %p2714_p9 = por %p2713_p10, %p2712_p8 }
 0x167   : > { %p2710_p7 = pneg %p2709_p4 }
 0x168   : > { %p2716_p12 = por %p2715_p11, %p2714_p9 }
 0x16a   : > { %p2717_p13 = pnand %p2716_p12, %p2710_p7 }
 0x16c   : > { %2720 = shalt.err (!%p2717_p13)
}
 0x16d   : > { %2611 = dma.vmem_to_hbm [thread:$0]  (%p2869_p5), %s3218_s16, 16, %s3216_s19, %s1918_s20  }
 0x16e   : > { %s2064_s16 = sld [smem:[#allocation2 + $0x1]]  ;;  %s313_s19 = sld [smem:[#allocation2]] }
 0x16f   : > { %s284_s20 = scalar_lea.vmem [#allocation6], %s3206_s13  ;;  %s3601_s9 = scalar_lea.hbm %s3651_s6, %s2145_s14 }
 0x170   : > { %s1947_s26 = sshll.u32 %s284_s20, 4  ;;  %s1922_s10 = scalar_lea.sflag [#allocation7], %s3206_s13  ;;  %s3603_s26 = int_to_ptr.vmem [resolvable:$true] %s1947_s26 }
 0x171   : > { %s2721_s11 = scalar_lea.vmem %s3603_s26, 16  ;;  %s2795_s12 = smov [#allocation6]  }
 0x172   : > { %p2722_p0 = scmp.ne.s32.totalorder %s3603_s26, %s2721_s11  ;;  %s2725_s25 = sshll.u32 %s2795_s12, 4  ;;  %s2726_s25 = int_to_ptr.vmem [resolvable:$false] %s2725_s25 }
 0x173   : > { %s2727_s15 = scalar_lea.vmem %s2726_s25, 32  ;;  %p2728_p3 = scmp.lt.s32.totalorder %s3603_s26, %s2726_s25 }
 0x174   : > { %p2723_p1 = pnand %p2722_p0, %p2869_p5  ;;  %p2729_p4 = scmp.lt.s32.totalorder %s2727_s15, %s2721_s11 }
 0x176   : > { %p2724_p2 = pneg %p2723_p1  ;;  %p2730_p7 = por %p2729_p4, %p2728_p3 }
 0x178   : > { %p2731_p8 = pnand %p2730_p7, %p2724_p2 }
 0x1ea   : > { %v2313_v49 = vpop.f32.mrb[0].mxu1 }
 0x1eb   : > { %v546_v21 = vpop.f32.mrb[1].mxu1  ;;  %v1594_v28 = vmul.f32 2.0, %v2313_v49  ;;  %v3245_v33 = vmul.f32 %v2313_v49, %v2313_v49 }
 0x1ec   : > { %v1593_v29 = vmul.f32 2.0, %v546_v21  ;;  %v3253_v37 = vmul.f32 %v546_v21, %v546_v21 }
 0x1ee   : > { %v2316_v22 = vpop.f32.mrb[2].mxu1 }
 0x1ef   : > { %v556_v23 = vpop.f32.mrb[3].mxu1  ;;  %v1596_v40 = vmul.f32 2.0, %v2316_v22  ;;  %v3269_v47 = vmul.f32 %v2316_v22, %v2316_v22 }
 0x1f0   : > { %v1595_v42 = vmul.f32 2.0, %v556_v23  ;;  %v3277_v52 = vmul.f32 %v556_v23, %v556_v23 }
 0x1f2   : > { %v2319_v24 = vpop.f32.mrb[4].mxu1 }
 0x1f3   : > { %v566_v25 = vpop.f32.mrb[5].mxu1  ;;  %v1598_v55 = vmul.f32 2.0, %v2319_v24  ;;  %v3293_v62 = vmul.f32 %v2319_v24, %v2319_v24 }
 0x1f4   : > { %v1597_v57 = vmul.f32 2.0, %v566_v25  ;;  %v3301_v2 = vmul.f32 %v566_v25, %v566_v25 }
 0x1f6   : > { %v2322_v26 = vpop.f32.mrb[6].mxu1 }
 0x1f7   : > { %v576_v27 = vpop.f32.mrb[7].mxu1  ;;  %v1600_v16 = vmul.f32 2.0, %v2322_v26  ;;  %v3317_v10 = vmul.f32 %v2322_v26, %v2322_v26 }
 0x1f8   : > { %v1599_v4 = vmul.f32 2.0, %v576_v27  ;;  %v3325_v15 = vmul.f32 %v576_v27, %v576_v27 }
 0x1fa   : > { %v2357_v30 = vpop.f32.mrb[8].mxu1 }
 0x1fb   : > { %v3243_v31 = vmul.f32 %v2357_v30, %v1594_v28  ;;  %v780_v32 = vpop.f32.mrb[9].mxu1  ;;  %v3247_v34 = vmul.f32 %v2357_v30, %v2357_v30  ;;  %v3249_v35 = vmul.f32 %v2357_v30, %v2313_v49 }
 0x1fc   : > { %v3251_v36 = vmul.f32 %v1593_v29, %v780_v32  ;;  %v3255_v38 = vmul.f32 %v780_v32, %v780_v32  ;;  %v3257_v39 = vmul.f32 %v780_v32, %v546_v21  ;;  %v1699_v29 = vlaneseq }
 0x1fd   : > { %v3261_v41 = vadd.f32 %v3247_v34, %v3245_v33 }
 0x1fe   : > { %v2360_v43 = vpop.f32.mrb[10].mxu1  ;;  %v3265_v44 = vadd.f32 %v3255_v38, %v3253_v37 }
 0x1ff   : > { %v3267_v45 = vmul.f32 %v2360_v43, %v1596_v40  ;;  %v790_v46 = vpop.f32.mrb[11].mxu1  ;;  %v3271_v48 = vmul.f32 %v2360_v43, %v2360_v43  ;;  %v3273_v50 = vmul.f32 %v2360_v43, %v2316_v22 }
 0x200   : > { %v3275_v51 = vmul.f32 %v1595_v42, %v790_v46  ;;  %v3279_v53 = vmul.f32 %v790_v46, %v790_v46  ;;  %v3281_v54 = vmul.f32 %v790_v46, %v556_v23 }
 0x201   : > { %v3285_v56 = vadd.f32 %v3271_v48, %v3269_v47 }
 0x202   : > { %v2363_v58 = vpop.f32.mrb[12].mxu1  ;;  %v3289_v59 = vadd.f32 %v3279_v53, %v3277_v52 }
 0x203   : > { %v3291_v60 = vmul.f32 %v2363_v58, %v1598_v55  ;;  %v800_v61 = vpop.f32.mrb[13].mxu1  ;;  %v3295_v63 = vmul.f32 %v2363_v58, %v2363_v58  ;;  %v3297_v0 = vmul.f32 %v2363_v58, %v2319_v24 }
 0x204   : > { %v3299_v1 = vmul.f32 %v1597_v57, %v800_v61  ;;  %v3303_v6 = vmul.f32 %v800_v61, %v800_v61  ;;  %v3305_v12 = vmul.f32 %v800_v61, %v566_v25  ;;  %v3354_v61 = vstv %s2064_s16 }
 0x205   : > { %v3309_v3 = vadd.f32 %v3295_v63, %v3293_v62 }
 0x206   : > { %v2366_v5 = vpop.f32.mrb[14].mxu1  ;;  %v3313_v7 = vadd.f32 %v3303_v6, %v3301_v2 }
 0x207   : > { %v3315_v8 = vmul.f32 %v2366_v5, %v1600_v16  ;;  %v810_v9 = vpop.f32.mrb[15].mxu1  ;;  %v3319_v11 = vmul.f32 %v2366_v5, %v2366_v5  ;;  %v3321_v13 = vmul.f32 %v2366_v5, %v2322_v26 }
 0x208   : > { %v3323_v14 = vmul.f32 %v1599_v4, %v810_v9  ;;  %v3327_v17 = vmul.f32 %v810_v9, %v810_v9  ;;  %v3329_v18 = vmul.f32 %v810_v9, %v576_v27 }
 0x209   : > { %v3333_v19 = vadd.f32 %v3319_v11, %v3317_v10 }
 0x20a   : > { %v2401_v20 = vpop.f32.mrb[16].mxu1  ;;  %v3337_v49 = vadd.f32 %v3327_v17, %v3325_v15 }
 0x20b   : > { %v1070_v21 = vsub.f32 %v2401_v20, %v3245_v33  ;;  %v1022_v22 = vpop.f32.mrb[17].mxu1  ;;  %v1700_v33 = vshrl.u32 %v1699_v29, 7 }
 0x20c   : > { %v1069_v23 = vsub.f32 %v1022_v22, %v3253_v37  ;;  %v3359_v22 = vand.u32 127, %v1699_v29 }
 0x20d   : > { %v1703_v55 = vadd.s32 24, %v1700_v33  ;;  %v1702_v4 = vadd.s32 16, %v1700_v33 }
 0x20e   : > { %v2404_v24 = vpop.f32.mrb[18].mxu1  ;;  %vm1830_vm4 = vcmp.ge.s32.totalorder %v3359_v22, 5  ;;  %vm1839_vm5 = vcmp.lt.s32.totalorder %v3359_v22, 11 }
 0x20f   : > { %v1072_v25 = vsub.f32 %v2404_v24, %v3269_v47  ;;  %v1032_v26 = vpop.f32.mrb[19].mxu1  ;;  %v1733_v24 = vand.u32 15, %v1703_v55  ;;  %v1726_v55 = vand.u32 15, %v1702_v4 }
 0x210   : > { %v1071_v27 = vsub.f32 %v1032_v26, %v3277_v52  ;;  %v1701_v52 = vadd.s32 8, %v1700_v33 }
 0x211   : > { %vm3383_vm6 = vcmp.lt.s32.totalorder %v1733_v24, 11  ;;  %vm3393_vm8 = vcmp.ge.s32.totalorder %v1726_v55, 5  ;;  %v3397_v24 = vadd.s32 48, %v1700_v33 }
 0x212   : > { %v2407_v28 = vpop.f32.mrb[20].mxu1  ;;  %v1719_v20 = vand.u32 15, %v1701_v52  ;;  %v1705_v52 = vadd.s32 40, %v1700_v33  ;;  %vm3462_vm13 = vmand %vm3383_vm6, %vm1830_vm4 }
 0x213   : > { %v1074_v30 = vsub.f32 %v2407_v28, %v3293_v62  ;;  %v1042_v32 = vpop.f32.mrb[21].mxu1  ;;  %vm3484_vm15 = vmand %vm3393_vm8, %vm1830_vm4 }
 0x214   : > { %v1073_v40 = vsub.f32 %v1042_v32, %v3301_v2  ;;  %v3357_v2 = vstv %s313_s19  ;;  %vm3369_vm3 = vcmp.lt.s32.totalorder %v1719_v20, 11  ;;  %v1747_v20 = vand.u32 15, %v1705_v52  ;;  %vm3493_vm1 = vmand %vm3462_vm13, %vm1839_vm5 }
 0x215   : > { %v1652_v26 = vadd.f32 %v3261_v41, %v3357_v2  ;;  %vm3429_vm10 = vmand %vm3369_vm3, %vm1830_vm4 }
 0x216   : > { %v3345_v42 = vpop.f32.mrb[22].mxu1  ;;  %vm3433_vm11 = vcmp.lt.s32.totalorder %v1747_v20, 11  ;;  %vm3449_vm12 = vmand %vm3429_vm10, %vm1839_vm5 }
 0x217   : > { %v1076_v37 = vsub.f32 %v3345_v42, %v3317_v10  ;;  %v3349_v43 = vpop.f32.mrb[23].mxu1  ;;  %v1657_v42 = vadd.f32 %v3337_v49, %v3357_v2  ;;  %vm3511_vm6 = vmand %vm3484_vm15, %vm1839_vm5 }
 0x218   : > { %v3663_v55 = vsub.f32 %v3349_v43, %v3325_v15  ;;  %vm1836_vm8 = vmand %vm3433_vm11, %vm1830_vm4 }
 0x21a   : > { %v2445_v47 = vpop.f32.mrb[24].mxu1 }
 0x21b   : > { %v1328_v57 = vsub.f32 %v2445_v47, %v3247_v34  ;;  %v1280_v58 = vpop.f32.mrb[25].mxu1  ;;  %v1712_v47 = vand.u32 15, %v1700_v33 }
 0x21c   : > { %v1327_v62 = vsub.f32 %v1280_v58, %v3255_v38  ;;  %v1651_v38 = vadd.f32 %v3265_v44, %v3357_v2  ;;  %v1704_v58 = vadd.s32 32, %v1700_v33  ;;  %v1654_v44 = vadd.f32 %v3285_v56, %v3357_v2 }
 0x21d   : > { %v1660_v16 = vadd.f32 %v1328_v57, %v1070_v21  ;;  %vm3387_vm7 = vcmp.ge.s32.totalorder %v1712_v47, 5 }
 0x21e   : > { %v1659_v5 = vadd.f32 %v1327_v62, %v1069_v23  ;;  %v2448_v9 = vpop.f32.mrb[26].mxu1  ;;  %vm3474_vm14 = vmand %vm3387_vm7, %vm1830_vm4 }
 0x21f   : > { %v1668_v34 = vadd.f32 %v1660_v16, %v3354_v61  ;;  %v1330_v28 = vsub.f32 %v2448_v9, %v3271_v48  ;;  %v1290_v32 = vpop.f32.mrb[27].mxu1  ;;  %v1611_v16 = vadd.f32 %v3357_v2, %v3243_v31  ;;  %v1613_v31 = vadd.f32 %v3357_v2, %v3267_v45  ;;  %vm3503_vm3 = vmand %vm3474_vm14, %vm1839_vm5 }
 0x220   : > { %v1667_v21 = vadd.f32 %v1659_v5, %v3354_v61  ;;  %v1329_v23 = vsub.f32 %v1290_v32, %v3279_v53 }
 0x221   : > { %v1676_v29 = vmul.f32 %v1668_v34, %v1652_v26  ;;  %v1662_v57 = vadd.f32 %v1330_v28, %v1072_v25  ;;  %v1653_v25 = vadd.f32 %v3289_v59, %v3357_v2 }
 0x222   : > { %v1675_v62 = vmul.f32 %v1667_v21, %v1651_v38  ;;  %v1661_v41 = vadd.f32 %v1329_v23, %v1071_v27  ;;  %v2451_v46 = vpop.f32.mrb[28].mxu1 }
 0x223   : > { %v1670_v48 = vadd.f32 %v1662_v57, %v3354_v61  ;;  %v1332_v53 = vsub.f32 %v2451_v46, %v3295_v63  ;;  %v1300_v5 = vpop.f32.mrb[29].mxu1  ;;  %v1740_v63 = vand.u32 15, %v1704_v58  ;;  %v3391_v46 = vadd.s32 56, %v1700_v33 }
 0x224   : > { %v1669_v27 = vadd.f32 %v1661_v41, %v3354_v61  ;;  %v1331_v4 = vsub.f32 %v1300_v5, %v3303_v6  ;;  %2662 = vrcp.f32 %v1676_v29 }
 0x225   : > { %v1678_v56 = vmul.f32 %v1670_v48, %v1654_v44  ;;  %v1664_v26 = vadd.f32 %v1332_v53, %v1074_v30  ;;  %v1656_v30 = vadd.f32 %v3309_v3, %v3357_v2  ;;  %v1761_v3 = vand.u32 15, %v3391_v46 }
 0x226   : > { %v1677_v59 = vmul.f32 %v1669_v27, %v1653_v25  ;;  %v1663_v28 = vadd.f32 %v1331_v4, %v1073_v40  ;;  %v2454_v32 = vpop.f32.mrb[30].mxu1  ;;  %v1655_v40 = vadd.f32 %v3313_v7, %v3357_v2  ;;  %vm3416_vm9 = vcmp.ge.s32.totalorder %v1740_v63, 5 }
 0x227   : > { %2664 = vrcp.f32 %v1678_v56  ;;  %v1672_v47 = vadd.f32 %v1664_v26, %v3354_v61  ;;  %v1334_v38 = vsub.f32 %v2454_v32, %v3319_v11  ;;  %v1310_v21 = vpop.f32.mrb[31].mxu1  ;;  %v1658_v11 = vadd.f32 %v3333_v19, %v3357_v2  ;;  %vm3524_vm7 = vmand %vm3416_vm9, %vm1830_vm4 }
 0x228   : > { %2666 = vrcp.f32 %v1677_v59  ;;  %v1671_v23 = vadd.f32 %v1663_v28, %v3354_v61  ;;  %v1333_v52 = vsub.f32 %v1310_v21, %v3327_v17  ;;  %v1754_v17 = vand.u32 15, %v3397_v24  ;;  %vm3557_vm11 = vmand %vm3524_vm7, %vm1839_vm5 }
 0x229   : > { %2668 = vrcp.f32 %v1675_v62  ;;  %v1680_v33 = vmul.f32 %v1672_v47, %v1656_v30  ;;  %v1666_v29 = vadd.f32 %v1334_v38, %v1076_v37  ;;  %v1610_v27 = vadd.f32 %v3357_v2, %v3251_v36 }
 0x22a   : > { %v1679_v57 = vmul.f32 %v1671_v23, %v1655_v40  ;;  %v1665_v7 = vadd.f32 %v1333_v52, %v3663_v55  ;;  %v2489_v58 = vpop.f32.mrb[40].mxu0  ;;  %v1615_v28 = vadd.f32 %v3357_v2, %v3291_v60  ;;  %vm3538_vm9 = vcmp.lt.s32.totalorder %v1761_v3, 11 }
 0x22b   : > { %2670 = vrcp.f32 %v1680_v33  ;;  %v1674_v10 = vadd.f32 %v1666_v29, %v3354_v61  ;;  %v1586_v37 = vsub.f32 %v2489_v58, %v3249_v35  ;;  %v2492_v19 = vpop.f32.mrb[32].mxu1  ;;  %v1538_v43 = vpop.f32.mrb[41].mxu0  ;;  %v1614_v29 = vadd.f32 %v3357_v2, %v3299_v1  ;;  %vm1838_vm13 = vmand %vm3538_vm9, %vm1830_vm4 }
 0x22c   : > { %2672 = vrcp.f32 %v1679_v57  ;;  %v1673_v44 = vadd.f32 %v1665_v7, %v3354_v61  ;;  %v1588_v49 = vsub.f32 %v2492_v19, %v3273_v50  ;;  %v1585_v35 = vsub.f32 %v1538_v43, %v3257_v39  ;;  %v1548_v48 = vpop.f32.mrb[33].mxu1  ;;  %vm1847_vm15 = vmand %vm1838_vm13, %vm1839_vm5 }
 0x22d   : > { %v1682_v53 = vmul.f32 %v1674_v10, %v1658_v11  ;;  %v1619_v5 = vmul.f32 2.0, %v1586_v37  ;;  %v1587_v25 = vsub.f32 %v1548_v48, %v3281_v54  ;;  %v1612_v54 = vadd.f32 %v3357_v2, %v3275_v51 }
 0x22e   : > { %v1681_v4 = vmul.f32 %v1673_v44, %v1657_v42  ;;  %v1621_v39 = vmul.f32 2.0, %v1588_v49  ;;  %v1618_v20 = vmul.f32 2.0, %v1585_v35  ;;  %v2663_v59 = vpop.eup %2662  ;;  %vm3547_vm10 = vcmp.ge.s32.totalorder %v1754_v17, 5 }
 0x22f   : > { %v1628_v56 = vadd.f32 %v3354_v61, %v1619_v5  ;;  %v1620_v26 = vmul.f32 2.0, %v1587_v25  ;;  %v2495_v63 = vpop.f32.mrb[34].mxu1  ;;  %2674 = vrcp.f32 %v1682_v53  ;;  %vm1837_vm14 = vmand %vm3547_vm10, %vm1830_vm4 }
 0x230   : > { %v1630_v45 = vadd.f32 %v3354_v61, %v1621_v39  ;;  %v1627_v51 = vadd.f32 %v3354_v61, %v1618_v20  ;;  %v1590_v32 = vsub.f32 %v2495_v63, %v3297_v0  ;;  %v1558_v30 = vpop.f32.mrb[35].mxu1  ;;  %2676 = vrcp.f32 %v1681_v4 }
 0x231   : > { %v2665_v47 = vpop.eup %2664  ;;  %v1636_v38 = vmul.f32 %v1628_v56, %v1611_v16  ;;  %v1629_v60 = vadd.f32 %v3354_v61, %v1620_v26  ;;  %v1589_v34 = vsub.f32 %v1558_v30, %v3305_v12  ;;  %v1616_v63 = vadd.f32 %v3357_v2, %v3323_v14 }
 0x232   : > { %v2667_v40 = vpop.eup %2666  ;;  %v1638_v23 = vmul.f32 %v1630_v45, %v1613_v31  ;;  %v1635_v52 = vmul.f32 %v1627_v51, %v1610_v27  ;;  %v1623_v33 = vmul.f32 2.0, %v1590_v32 }
 0x233   : > { %v2669_v6 = vpop.eup %2668  ;;  %v1692_v57 = vmul.f32 %v2663_v59, %v1636_v38  ;;  %v1637_v11 = vmul.f32 %v1629_v60, %v1612_v54  ;;  %v1622_v55 = vmul.f32 2.0, %v1589_v34  ;;  %v2498_v7 = vpop.f32.mrb[36].mxu1  ;;  %v1617_v54 = vadd.f32 %v3357_v2, %v3315_v8 }
 0x234   : > { %v1694_v58 = vmul.f32 %v2665_v47, %v1638_v23  ;;  %v1691_v10 = vmul.f32 %v2669_v6, %v1635_v52  ;;  %v1632_v42 = vadd.f32 %v3354_v61, %v1623_v33  ;;  %v1592_v37 = vsub.f32 %v2498_v7, %v3321_v13  ;;  %v1568_v15 = vpop.f32.mrb[37].mxu1 }
 0x235   : > { %v2671_v19 = vpop.eup %2670  ;;  %v1886_v43 = vsel %vm3449_vm12, %v1692_v57, 0.0  ;;  %v1693_v44 = vmul.f32 %v2667_v40, %v1637_v11  ;;  %v1631_v49 = vadd.f32 %v3354_v61, %v1622_v55  ;;  %v1591_v48 = vsub.f32 %v1568_v15, %v3329_v18  ;;  %vm3564_vm12 = vmand %vm1836_vm8, %vm1839_vm5 }
 0x236   : > { %v2673_v16 = vpop.eup %2672  ;;  %v1894_v13 = vsel %vm325_vm0, %v1886_v43, 0.0  ;;  %v1885_v53 = vsel %vm3503_vm3, %v1691_v10, 0.0  ;;  %v1640_v5 = vmul.f32 %v1632_v42, %v1615_v28  ;;  %v1888_v62 = vsel %vm3493_vm1, %v1694_v58, 0.0  ;;  %vm1846_vm1 = vmand %vm1837_vm14, %vm1839_vm5 }
 0x237   : > { %v1893_v18 = vsel %vm325_vm0, %v1885_v53, 0.0  ;;  %v1887_v25 = vsel %vm3511_vm6, %v1693_v44, 0.0  ;;  %v1639_v27 = vmul.f32 %v1631_v49, %v1614_v29  ;;  %v1625_v39 = vmul.f32 2.0, %v1592_v37 }
 0x238   : > { %v1895_v46 = vadd.f32 %v1894_v13, %v1893_v18  ;;  %v1696_v3 = vmul.f32 %v2671_v19, %v1640_v5  ;;  %v1896_v24 = vsel %vm325_vm0, %v1887_v25, 0.0  ;;  %v1624_v31 = vmul.f32 2.0, %v1591_v48 }
 0x239   : > { %v1695_v20 = vmul.f32 %v2673_v16, %v1639_v27  ;;  %v1634_v36 = vadd.f32 %v3354_v61, %v1625_v39  ;;  %v2675_v26 = vpop.eup %2674  ;;  %v1898_v59 = vsel %vm325_vm0, %v1888_v62, 0.0 }
 0x23a   : > { %v1897_v56 = vadd.f32 %v1896_v24, %v1895_v46  ;;  %v1633_v45 = vadd.f32 %v3354_v61, %v1624_v31  ;;  %v2677_v8 = vpop.eup %2676  ;;  %v1890_v51 = vsel %vm3564_vm12, %v1696_v3, 0.0 }
 0x23b   : > { %v1889_v28 = vsel %vm3557_vm11, %v1695_v20, 0.0  ;;  %v1642_v32 = vmul.f32 %v1634_v36, %v1617_v54  ;;  %v1902_v47 = vsel %vm325_vm0, %v1890_v51, 0.0 }
 0x23c   : > { %v1899_v9 = vadd.f32 %v1898_v59, %v1897_v56  ;;  %v1900_v14 = vsel %vm325_vm0, %v1889_v28, 0.0  ;;  %v1641_v2 = vmul.f32 %v1633_v45, %v1616_v63 }
 0x23d   : > { %v1698_v61 = vmul.f32 %v2675_v26, %v1642_v32 }
 0x23e   : > { %v1901_v30 = vadd.f32 %v1900_v14, %v1899_v9  ;;  %v1697_v38 = vmul.f32 %v2677_v8, %v1641_v2 }
 0x23f   : > { %v1892_v21 = vsel %vm1847_vm15, %v1698_v61, 0.0 }
 0x240   : > { %v1903_v60 = vadd.f32 %v1902_v47, %v1901_v30  ;;  %v1891_v34 = vsel %vm1846_vm1, %v1697_v38, 0.0  ;;  %v1906_v0 = vsel %vm325_vm0, %v1892_v21, 0.0 }
 0x241   : > { %v1904_v40 = vsel %vm325_vm0, %v1891_v34, 0.0 }
 0x242   : > { %v1905_v23 = vadd.f32 %v1904_v40, %v1903_v60 }
 0x244   : > { %v1907_v52 = vadd.f32 %v1906_v0, %v1905_v23 }
 0x246   : > { %v1908_v33 = vrot.slane %v1907_v52, 4 }
 0x248   : > { %v1909_v6 = vadd.f32 %v1908_v33, %v1907_v52 }
 0x24a   : > { %v1910_v29 = vrot.slane %v1909_v6, 2 }
 0x24c   : > { %v1911_v22 = vadd.f32 %v1910_v29, %v1909_v6 }
 0x24e   : > { %v1912_v57 = vrot.slane %v1911_v22, 1 }
 0x250   : > { %v1913_v12 = vadd.f32 %v1912_v57, %v1911_v22 }
 0x252   : > { %1916 = vst.msk [vmem:[%s284_s20] sm:$0x1] %vm1914_vm2, %v1913_v12 }
 0x253   : > { %2734 = shalt.err (!%p2731_p8)
}
 0x254   : > { %s2735_s13 = scalar_lea.hbm %s3601_s9, 16  ;;  %s2739_s18 = scalar_lea.hbm %s3651_s6, 32 }
 0x255   : > { %p2736_p10 = scmp.ne.s32.totalorder %s3601_s9, %s2735_s13  ;;  %p2740_p12 = scmp.lt.u32.totalorder %s3601_s9, %s3651_s6 }
 0x256   : > { %p2741_p13 = scmp.lt.u32.totalorder %s2739_s18, %s2735_s13  ;;  %p2743_p1 = scmp.lt.u32.totalorder %s2735_s13, %s3601_s9 }
 0x257   : > { %p2737_p9 = pnand %p2736_p10, %p2869_p5 }
 0x258   : > { %p2742_p0 = por %p2741_p13, %p2740_p12 }
 0x259   : > { %p2738_p11 = pneg %p2737_p9 }
 0x25a   : > { %p2744_p2 = por %p2743_p1, %p2742_p0 }
 0x25c   : > { %p2745_p3 = pnand %p2744_p2, %p2738_p11 }
 0x25e   : > { %2748 = shalt.err (!%p2745_p3)
}
 0x25f   : > { %2612 = dma.vmem_to_hbm [thread:$0]  (%p2869_p5), %s3603_s26, 16, %s3601_s9, %s1922_s10  }
 0x260 PF: > { %p2628_p4 = scmp.ge.s32.totalorder %s2791_s24, 2  ;;  %s1959_s20 = sand.u32 1, %s2779_s21  }
 0x261   : > { %s1960_s28 = scalar_lea.sflag [#allocation3], %s1959_s20 }
 0x262   : > { %p2620_p7 = pnand %p2628_p4, %p2873_p6 }
 0x264   : > { %2770 = dma.done.wait (!%p2620_p7), %s1960_s28, 16  }
 0x265   : > { %2772 = vsyncadd (!%p2620_p7), %s1960_s28, 4294967280  ;;  %s1968_s29 = scalar_lea.sflag [#allocation7], %s1959_s20 }
 0x266   : > { %2774 = dma.done.wait (!%p2620_p7), %s1968_s29, 16  }
 0x267   : > { %2776 = vsyncadd (!%p2620_p7), %s1968_s29, 4294967280  ;;  %p21_p5 = scmp.ge.s32.totalorder %s2856_s27, 4   ;;  %s3694_s21 = smov %s2783_s22 }
 0x268   : > { %s3695_s22 = smov %s2787_s23  ;;  %s3696_s23 = smov %s2867_s30 }
 0x269   : > { %s3697_s24 = smov %s2856_s27  ;;  %23 = sbr.rel (!%p21_p5) target bundleno = 6 (0x6), region = 100 }
 0x270   :  { %1972 = vsyncpa [#allocation3], 1 }
 0x271   :  { %1974 = vsyncpa [#allocation3 + $0x1], 1 }
 0x272   :  { %1975 = vsyncpa [#allocation7], 1 }
 0x273   :  { %1977 = vsyncpa [#allocation7 + $0x1], 1 }
 0x274   :  { %1978 = vsyncpa [#allocation4], 1 }
 0x275   :  { %1980 = vsyncpa [#allocation4 + $0x1], 1 }

</bundles_post_ra>
